<compile_context>
chip_gen: v5e
topology: v5e:2x2
jax: 0.10.0
libtpu: 0.0.40
codegen_flags: <defaults>
</compile_context>

<pallas_src>
import functools

import jax
import jax.numpy as jnp
from jax import lax
from jax.experimental import pallas as pl
from jax.experimental.pallas import tpu as pltpu


def _round_up(n, m):
    return ((n + m - 1) // m) * m


def _mlp_kernel(x_ref,
                w1_ref, b1_ref,
                w2_ref, b2_ref,
                w3_ref, b3_ref,
                w4_ref, b4_ref,
                w5_ref, b5_ref,
                o_ref,
                *, chunk):
    # Weights (bf16, already transposed to (out, in)) and biases (f32 (out, 1)
    # columns) are VMEM-resident across all grid steps; load once per step,
    # hoisted out of the chunk loop.
    w1, w2, w3, w4, w5 = (w1_ref[...], w2_ref[...], w3_ref[...],
                          w4_ref[...], w5_ref[...])
    b1, b2, b3, b4, b5 = (b1_ref[...], b2_ref[...], b3_ref[...],
                          b4_ref[...], b5_ref[...])

    tb = x_ref.shape[1]          # lanes (batch) per grid step
    n_chunks = tb // chunk

    def body(c, carry):
        s = pl.multiple_of(c * chunk, chunk)
        x = x_ref[:, pl.ds(s, chunk)].astype(jnp.bfloat16)        # (13, chunk)

        h = jnp.dot(w1, x, preferred_element_type=jnp.float32) + b1          # (26, chunk)
        h = jnp.maximum(h, 0.0)

        h = jnp.dot(w2, h.astype(jnp.bfloat16),
                    preferred_element_type=jnp.float32) + b2                 # (26, chunk)
        h = jnp.maximum(h, 0.0)

        h = jnp.dot(w3, h.astype(jnp.bfloat16),
                    preferred_element_type=jnp.float32) + b3                 # (26, chunk)
        h = jnp.maximum(h, 0.0)

        h = jnp.dot(w4, h.astype(jnp.bfloat16),
                    preferred_element_type=jnp.float32) + b4                 # (6, chunk)
        h = jnp.maximum(h, 0.0)

        h = jnp.dot(w5, h.astype(jnp.bfloat16),
                    preferred_element_type=jnp.float32) + b5                 # (2, chunk)

        o_ref[:, pl.ds(s, chunk)] = h.astype(o_ref.dtype)
        return carry

    lax.fori_loop(0, n_chunks, body, 0, unroll=True)


def mlp_forward(x, params, *, tb=2048, chunk=512):
    """x: (B, 13) float32. params: list of (W, b) with W shaped (in, out)."""
    B, F = x.shape
    assert F == 13, F

    # ---- tile selection (lane axis = batch) --------------------------------
    chunk = min(chunk, _round_up(B, 128))        # lane sub-chunk, multiple of 128
    Bp = _round_up(B, chunk)
    n_chunks = Bp // chunk
    cpt = max(1, min(tb // chunk, n_chunks))     # chunks per grid step
    if n_chunks >= 2:
        # Keep the grid at >= 2 steps so v7x's two TensorCores both get work.
        cpt = max(1, min(cpt, n_chunks // 2))
    tb = cpt * chunk
    Bp = _round_up(Bp, tb)

    # ---- feature-major input: (13, Bp), zero-padded along lanes ------------
    xT = x.T
    if Bp != B:
        xT = jnp.pad(xT, ((0, 0), (0, Bp - B)))

    # ---- pack params: transposed bf16 weights, (out, 1) f32 bias columns ----
    flat = []
    for (w, b) in params:
        flat.append(w.T.astype(jnp.bfloat16))            # (out, in)
        flat.append(b.reshape(-1, 1).astype(jnp.float32))  # (out, 1)

    grid = (Bp // tb,)

    def resident(a):
        # Full-block, constant index_map -> stays in VMEM across grid steps.
        return pl.BlockSpec(a.shape, lambda i: (0, 0))

    in_specs = [pl.BlockSpec((F, tb), lambda i: (0, i))] + [resident(a) for a in flat]
    out_specs = pl.BlockSpec((2, tb), lambda i: (0, i))
    out_shape = jax.ShapeDtypeStruct((2, Bp), jnp.float32)

    # flops = 2 * (13*26 + 26*26 + 26*26 + 26*6 + 6*2) = 2 * 1858 per sample.
    param_bytes = sum(int(a.size) * a.dtype.itemsize for a in flat)
    cost = pl.CostEstimate(
        flops=2 * 1858 * Bp,
        transcendentals=0,
        bytes_accessed=Bp * (13 * 4 + 2 * 4) + param_bytes,
    )

    kernel = functools.partial(_mlp_kernel, chunk=chunk)

    out = pl.pallas_call(
        kernel,
        out_shape=out_shape,
        grid=grid,
        in_specs=in_specs,
        out_specs=out_specs,
        compiler_params=pltpu.CompilerParams(
            dimension_semantics=("parallel",),
        ),
        cost_estimate=cost,
    )(xT, *flat)

    return out[:, :B].T          # back to (B, 2)


def init_params(key):
    """Deterministic init mimicking PyTorch Linear default U(-1/sqrt(in), 1/sqrt(in))."""
    dims = [(13, 26), (26, 26), (26, 26), (26, 6), (6, 2)]
    params = []
    for (fan_in, fan_out) in dims:
        key, kw, kb = jax.random.split(key, 3)
        bound = 1.0 / jnp.sqrt(jnp.float32(fan_in))
        w = jax.random.uniform(kw, (fan_in, fan_out), jnp.float32, -bound, bound)
        b = jax.random.uniform(kb, (fan_out,), jnp.float32, -bound, bound)
        params.append((w, b))
    return params


def reference_forward(x, params, *, bf16_operands=False):
    h = x
    for i, (w, b) in enumerate(params):
        if bf16_operands:
            h = jnp.dot(h.astype(jnp.bfloat16), w.astype(jnp.bfloat16),
                        preferred_element_type=jnp.float32) + b
        else:
            h = h @ w + b
        if i < len(params) - 1:
            h = jnp.maximum(h, 0.0)
    return h


if __name__ == "__main__":
    key = jax.random.PRNGKey(0)
    key, kx = jax.random.split(key)
    params = init_params(key)

    # A tiny batch (single padded tile) and a non-tile-multiple batch that
    # exercises the multi-step batch grid + lane padding path.
    for B in (8, 2050):
        kx, kb = jax.random.split(kx)
        x = jax.random.normal(kb, (B, 13), jnp.float32)

        out = jax.block_until_ready(mlp_forward(x, params))
        assert out.shape == (B, 2), out.shape

        # Exact-path reference (bf16 operands, f32 accumulation) -> tight tolerance.
        ref_bf16 = reference_forward(x, params, bf16_operands=True)
        assert jnp.allclose(out, ref_bf16, atol=2e-4, rtol=2e-4), (
            float(jnp.max(jnp.abs(out - ref_bf16))))

        # Sanity check vs full-f32 math -> loose tolerance (bf16 operand rounding).
        ref_f32 = reference_forward(x, params)
        assert jnp.allclose(out, ref_f32, atol=1e-1, rtol=1e-1), (
            float(jnp.max(jnp.abs(out - ref_f32))))

    print("KERNEL_OK")
</pallas_src>

<mosaic_0001>
module attributes {stable_mosaic.version = 11 : i64} {
  func.func @_mlp_kernel(%arg0: i32, %arg1: memref<13x128xf32, #tpu.memory_space<vmem>>, %arg2: memref<26x13xbf16, #tpu.memory_space<vmem>>, %arg3: memref<26x1xf32, #tpu.memory_space<vmem>>, %arg4: memref<26x26xbf16, #tpu.memory_space<vmem>>, %arg5: memref<26x1xf32, #tpu.memory_space<vmem>>, %arg6: memref<26x26xbf16, #tpu.memory_space<vmem>>, %arg7: memref<26x1xf32, #tpu.memory_space<vmem>>, %arg8: memref<6x26xbf16, #tpu.memory_space<vmem>>, %arg9: memref<6x1xf32, #tpu.memory_space<vmem>>, %arg10: memref<2x6xbf16, #tpu.memory_space<vmem>>, %arg11: memref<2x1xf32, #tpu.memory_space<vmem>>, %arg12: memref<2x128xf32, #tpu.memory_space<vmem>>) attributes {dimension_semantics = [#tpu.dimension_semantics<parallel>], iteration_bounds = array<i64: 1>, scalar_prefetch = 0 : i64, scratch_operands = 0 : i64, tpu.core_type = #tpu.core_type<tc>, window_params = [{transform_indices = @transform_0, window_bounds = array<i64: 13, 128>}, {pipeline_mode = #tpu.pipeline_mode<synchronous>, transform_indices = @transform_1, window_bounds = array<i64: 26, 13>}, {pipeline_mode = #tpu.pipeline_mode<synchronous>, transform_indices = @transform_2, window_bounds = array<i64: 26, 1>}, {pipeline_mode = #tpu.pipeline_mode<synchronous>, transform_indices = @transform_3, window_bounds = array<i64: 26, 26>}, {pipeline_mode = #tpu.pipeline_mode<synchronous>, transform_indices = @transform_4, window_bounds = array<i64: 26, 1>}, {pipeline_mode = #tpu.pipeline_mode<synchronous>, transform_indices = @transform_5, window_bounds = array<i64: 26, 26>}, {pipeline_mode = #tpu.pipeline_mode<synchronous>, transform_indices = @transform_6, window_bounds = array<i64: 26, 1>}, {pipeline_mode = #tpu.pipeline_mode<synchronous>, transform_indices = @transform_7, window_bounds = array<i64: 6, 26>}, {pipeline_mode = #tpu.pipeline_mode<synchronous>, transform_indices = @transform_8, window_bounds = array<i64: 6, 1>}, {pipeline_mode = #tpu.pipeline_mode<synchronous>, transform_indices = @transform_9, window_bounds = array<i64: 2, 6>}, {pipeline_mode = #tpu.pipeline_mode<synchronous>, transform_indices = @transform_10, window_bounds = array<i64: 2, 1>}, {transform_indices = @transform_11, window_bounds = array<i64: 2, 128>}]} {
    %c0 = arith.constant 0 : index
    %c0_0 = arith.constant 0 : index
    %0 = vector.load %arg2[%c0, %c0_0] : memref<26x13xbf16, #tpu.memory_space<vmem>>, vector<26x13xbf16>
    %c0_1 = arith.constant 0 : index
    %c0_2 = arith.constant 0 : index
    %1 = vector.load %arg4[%c0_1, %c0_2] : memref<26x26xbf16, #tpu.memory_space<vmem>>, vector<26x26xbf16>
    %c0_3 = arith.constant 0 : index
    %c0_4 = arith.constant 0 : index
    %2 = vector.load %arg6[%c0_3, %c0_4] : memref<26x26xbf16, #tpu.memory_space<vmem>>, vector<26x26xbf16>
    %c0_5 = arith.constant 0 : index
    %c0_6 = arith.constant 0 : index
    %3 = vector.load %arg8[%c0_5, %c0_6] : memref<6x26xbf16, #tpu.memory_space<vmem>>, vector<6x26xbf16>
    %c0_7 = arith.constant 0 : index
    %c0_8 = arith.constant 0 : index
    %4 = vector.load %arg10[%c0_7, %c0_8] : memref<2x6xbf16, #tpu.memory_space<vmem>>, vector<2x6xbf16>
    %c0_9 = arith.constant 0 : index
    %c0_10 = arith.constant 0 : index
    %5 = vector.load %arg3[%c0_9, %c0_10] : memref<26x1xf32, #tpu.memory_space<vmem>>, vector<26x1xf32>
    %c0_11 = arith.constant 0 : index
    %c0_12 = arith.constant 0 : index
    %6 = vector.load %arg5[%c0_11, %c0_12] : memref<26x1xf32, #tpu.memory_space<vmem>>, vector<26x1xf32>
    %c0_13 = arith.constant 0 : index
    %c0_14 = arith.constant 0 : index
    %7 = vector.load %arg7[%c0_13, %c0_14] : memref<26x1xf32, #tpu.memory_space<vmem>>, vector<26x1xf32>
    %c0_15 = arith.constant 0 : index
    %c0_16 = arith.constant 0 : index
    %8 = vector.load %arg9[%c0_15, %c0_16] : memref<6x1xf32, #tpu.memory_space<vmem>>, vector<6x1xf32>
    %c0_17 = arith.constant 0 : index
    %c0_18 = arith.constant 0 : index
    %9 = vector.load %arg11[%c0_17, %c0_18] : memref<2x1xf32, #tpu.memory_space<vmem>>, vector<2x1xf32>
    %c0_i32 = arith.constant 0 : i32
    %c128_i32 = arith.constant 128 : i32
    %10 = arith.muli %c0_i32, %c128_i32 : i32
    %11 = tpu.assume_multiple %10, 128 : i32
    %c0_19 = arith.constant 0 : index
    %12 = arith.index_cast %11 : i32 to index
    %13 = vector.load %arg1[%c0_19, %12] : memref<13x128xf32, #tpu.memory_space<vmem>>, vector<13x128xf32>
    %14 = arith.truncf %13 : vector<13x128xf32> to vector<13x128xbf16>
    %cst = arith.constant dense<0.000000e+00> : vector<26x128xf32>
    %15 = tpu.matmul %0, %14, %cst {dimension_numbers = #tpu.dot_dimension_numbers<[1], [0], [0], [1], [0, 0, 1, 1], [], []>} : vector<26x13xbf16>, vector<13x128xbf16>, vector<26x128xf32> -> vector<26x128xf32>
    %16 = vector.broadcast %5 : vector<26x1xf32> to vector<26x128xf32>
    %17 = arith.addf %15, %16 : vector<26x128xf32>
    %cst_20 = arith.constant 0.000000e+00 : f32
    %18 = vector.broadcast %cst_20 : f32 to vector<26x128xf32>
    %19 = arith.maximumf %17, %18 : vector<26x128xf32>
    %20 = arith.truncf %19 : vector<26x128xf32> to vector<26x128xbf16>
    %cst_21 = arith.constant dense<0.000000e+00> : vector<26x128xf32>
    %21 = tpu.matmul %1, %20, %cst_21 {dimension_numbers = #tpu.dot_dimension_numbers<[1], [0], [0], [1], [0, 0, 1, 1], [], []>} : vector<26x26xbf16>, vector<26x128xbf16>, vector<26x128xf32> -> vector<26x128xf32>
    %22 = vector.broadcast %6 : vector<26x1xf32> to vector<26x128xf32>
    %23 = arith.addf %21, %22 : vector<26x128xf32>
    %cst_22 = arith.constant 0.000000e+00 : f32
    %24 = vector.broadcast %cst_22 : f32 to vector<26x128xf32>
    %25 = arith.maximumf %23, %24 : vector<26x128xf32>
    %26 = arith.truncf %25 : vector<26x128xf32> to vector<26x128xbf16>
    %cst_23 = arith.constant dense<0.000000e+00> : vector<26x128xf32>
    %27 = tpu.matmul %2, %26, %cst_23 {dimension_numbers = #tpu.dot_dimension_numbers<[1], [0], [0], [1], [0, 0, 1, 1], [], []>} : vector<26x26xbf16>, vector<26x128xbf16>, vector<26x128xf32> -> vector<26x128xf32>
    %28 = vector.broadcast %7 : vector<26x1xf32> to vector<26x128xf32>
    %29 = arith.addf %27, %28 : vector<26x128xf32>
    %cst_24 = arith.constant 0.000000e+00 : f32
    %30 = vector.broadcast %cst_24 : f32 to vector<26x128xf32>
    %31 = arith.maximumf %29, %30 : vector<26x128xf32>
    %32 = arith.truncf %31 : vector<26x128xf32> to vector<26x128xbf16>
    %cst_25 = arith.constant dense<0.000000e+00> : vector<6x128xf32>
    %33 = tpu.matmul %3, %32, %cst_25 {dimension_numbers = #tpu.dot_dimension_numbers<[1], [0], [0], [1], [0, 0, 1, 1], [], []>} : vector<6x26xbf16>, vector<26x128xbf16>, vector<6x128xf32> -> vector<6x128xf32>
    %34 = vector.broadcast %8 : vector<6x1xf32> to vector<6x128xf32>
    %35 = arith.addf %33, %34 : vector<6x128xf32>
    %cst_26 = arith.constant 0.000000e+00 : f32
    %36 = vector.broadcast %cst_26 : f32 to vector<6x128xf32>
    %37 = arith.maximumf %35, %36 : vector<6x128xf32>
    %38 = arith.truncf %37 : vector<6x128xf32> to vector<6x128xbf16>
    %cst_27 = arith.constant dense<0.000000e+00> : vector<2x128xf32>
    %39 = tpu.matmul %4, %38, %cst_27 {dimension_numbers = #tpu.dot_dimension_numbers<[1], [0], [0], [1], [0, 0, 1, 1], [], []>} : vector<2x6xbf16>, vector<6x128xbf16>, vector<2x128xf32> -> vector<2x128xf32>
    %40 = vector.broadcast %9 : vector<2x1xf32> to vector<2x128xf32>
    %41 = arith.addf %39, %40 : vector<2x128xf32>
    %c0_28 = arith.constant 0 : index
    %42 = arith.index_cast %11 : i32 to index
    %43 = vector.load %arg12[%c0_28, %42] : memref<2x128xf32, #tpu.memory_space<vmem>>, vector<2x128xf32>
    tpu.vector_store %arg12[%c0_28, %42], %41 {strides = array<i32>} : memref<2x128xf32, #tpu.memory_space<vmem>>, vector<2x128xf32>,
    %c1_i32 = arith.constant 1 : i32
    return
  }
  func.func @transform_0(%arg0: i32) -> (i32, i32) {
    %c0_i32 = arith.constant 0 : i32
    %c0_i32_0 = arith.constant 0 : i32
    return %c0_i32, %arg0 : i32, i32
  }
  func.func @transform_1(%arg0: i32) -> (i32, i32) {
    %c0_i32 = arith.constant 0 : i32
    %c0_i32_0 = arith.constant 0 : i32
    %c0_i32_1 = arith.constant 0 : i32
    return %c0_i32, %c0_i32_0 : i32, i32
  }
  func.func @transform_2(%arg0: i32) -> (i32, i32) {
    %c0_i32 = arith.constant 0 : i32
    %c0_i32_0 = arith.constant 0 : i32
    %c0_i32_1 = arith.constant 0 : i32
    return %c0_i32, %c0_i32_0 : i32, i32
  }
  func.func @transform_3(%arg0: i32) -> (i32, i32) {
    %c0_i32 = arith.constant 0 : i32
    %c0_i32_0 = arith.constant 0 : i32
    %c0_i32_1 = arith.constant 0 : i32
    return %c0_i32, %c0_i32_0 : i32, i32
  }
  func.func @transform_4(%arg0: i32) -> (i32, i32) {
    %c0_i32 = arith.constant 0 : i32
    %c0_i32_0 = arith.constant 0 : i32
    %c0_i32_1 = arith.constant 0 : i32
    return %c0_i32, %c0_i32_0 : i32, i32
  }
  func.func @transform_5(%arg0: i32) -> (i32, i32) {
    %c0_i32 = arith.constant 0 : i32
    %c0_i32_0 = arith.constant 0 : i32
    %c0_i32_1 = arith.constant 0 : i32
    return %c0_i32, %c0_i32_0 : i32, i32
  }
  func.func @transform_6(%arg0: i32) -> (i32, i32) {
    %c0_i32 = arith.constant 0 : i32
    %c0_i32_0 = arith.constant 0 : i32
    %c0_i32_1 = arith.constant 0 : i32
    return %c0_i32, %c0_i32_0 : i32, i32
  }
  func.func @transform_7(%arg0: i32) -> (i32, i32) {
    %c0_i32 = arith.constant 0 : i32
    %c0_i32_0 = arith.constant 0 : i32
    %c0_i32_1 = arith.constant 0 : i32
    return %c0_i32, %c0_i32_0 : i32, i32
  }
  func.func @transform_8(%arg0: i32) -> (i32, i32) {
    %c0_i32 = arith.constant 0 : i32
    %c0_i32_0 = arith.constant 0 : i32
    %c0_i32_1 = arith.constant 0 : i32
    return %c0_i32, %c0_i32_0 : i32, i32
  }
  func.func @transform_9(%arg0: i32) -> (i32, i32) {
    %c0_i32 = arith.constant 0 : i32
    %c0_i32_0 = arith.constant 0 : i32
    %c0_i32_1 = arith.constant 0 : i32
    return %c0_i32, %c0_i32_0 : i32, i32
  }
  func.func @transform_10(%arg0: i32) -> (i32, i32) {
    %c0_i32 = arith.constant 0 : i32
    %c0_i32_0 = arith.constant 0 : i32
    %c0_i32_1 = arith.constant 0 : i32
    return %c0_i32, %c0_i32_0 : i32, i32
  }
  func.func @transform_11(%arg0: i32) -> (i32, i32) {
    %c0_i32 = arith.constant 0 : i32
    %c0_i32_0 = arith.constant 0 : i32
    return %c0_i32, %arg0 : i32, i32
  }
}

</mosaic_0001>

<bundles_post_ra>
// kernel: tpu_custom_call.1
= control target key start
LH: loop header
LB: loop body
LE: loop exit
PB: predicated region body
PF: predicated region fallthrough
CT: control target
= control target key end

     0   :  { %vm108_vm0 = vcmask 1045504   ;;  %v409_v3 = vmov 0   ;;  %vm109_vm1 = vcmask 1046528   ;;  %v410_v6 = vmov 65535   ;;  %s564_s0 = inlined_call_operand.vmem [shape: f32[13,128], index: 0, kind: input, shape index: {}]   ;;  %s565_s1 = inlined_call_operand.vmem [shape: bf16[26,13], index: 1, kind: input, shape index: {}]   ;;  %s566_s2 = inlined_call_operand.vmem [shape: f32[26,1], index: 2, kind: input, shape index: {}]   ;;  %s567_s3 = inlined_call_operand.vmem [shape: bf16[26,26], index: 3, kind: input, shape index: {}]   ;;  %s568_s4 = inlined_call_operand.vmem [shape: f32[26,1], index: 4, kind: input, shape index: {}]   ;;  %s569_s5 = inlined_call_operand.vmem [shape: bf16[26,26], index: 5, kind: input, shape index: {}]   ;;  %s570_s6 = inlined_call_operand.vmem [shape: f32[26,1], index: 6, kind: input, shape index: {}]   ;;  %s571_s7 = inlined_call_operand.vmem [shape: bf16[6,26], index: 7, kind: input, shape index: {}]   ;;  %s572_s8 = inlined_call_operand.vmem [shape: f32[6,1], index: 8, kind: input, shape index: {}]   ;;  %s573_s9 = inlined_call_operand.vmem [shape: bf16[2,6], index: 9, kind: input, shape index: {}]   ;;  %s574_s10 = inlined_call_operand.vmem [shape: f32[2,1], index: 10, kind: input, shape index: {}]   ;;  %s575_s11 = inlined_call_operand.hbm [shape: f32[2,128], index: 11, kind: output, shape index: {}]  }
   0x1   :  { %v56_v0 = vld [vmem:[%s566_s2 + $0x10] sm:$0xff]  ;;  %v68_v1 = vld [vmem:[%s564_s0] sm:$0xff]  ;;  %v69_v2 = vld [vmem:[%s564_s0 + $0x8] sm:$0x1f]  ;;  %380 = vset.pattern.permute.xlu0 %v409_v3  ;;  %381 = vset.pattern.permute.xlu1 %v409_v3  ;;  %v110_v7 = vsel %vm108_vm0, 4294967295, %v410_v6 }
   0x2   :  { %v70_v4 = vpack.c.bf16 %v69_v2, %v68_v1  ;;  %v54_v5 = vld [vmem:[%s566_s2] sm:$0xff]  ;;  %83 = vperm.xlu0 %380, %v56_v0   ;;  %v111_v8 = vsel %vm109_vm1, %v110_v7, 0  ;;  %382 = vset.pattern.permute.xlu2 %v409_v3 }
   0x3   :  { %73 = vperm.xlu1 %381, %v54_v5   ;;  %v371_v10 = vld [vmem:[%s565_s1] sm:$0xff] }
   0x4   :  { %v113_v9 = vand.u32 %v111_v8, %v70_v4 }
   0x5   :  { %16 = vsyncpa [#allocation3], 0  ;;  %vm101_vm2 = vcmask 105472   ;;  %v57_v11 = vld [vmem:[%s566_s2 + $0x18] sm:$0x3]  ;;  %v55_v12 = vld [vmem:[%s566_s2 + $0x8] sm:$0xff] }
   0x6   :  { %122 = vmatpush.bf16.msra.mxu0 %v113_v9  ;;  %v58_v13 = vld [vmem:[%s568_s4] sm:$0xff]  ;;  %v59_v14 = vld [vmem:[%s568_s4 + $0x8] sm:$0xff]  ;;  %v65_v18 = vld [vmem:[%s570_s6 + $0x18] sm:$0x3]  ;;  %vm177_vm3 = vcmask 1044480   ;;  %vm170_vm4 = vcmask 211968  }
   0x7   :  { %v345_v15 = vld [vmem:[%s565_s1 + $0x8] sm:$0xf]  ;;  %v372_v16 = vld [vmem:[%s565_s1 + $0x8] sm:$0x10]  ;;  %v62_v19 = vld [vmem:[%s570_s6] sm:$0xff]  ;;  %vm305_vm5 = vcmask 1042432  }
   0x8   :  { %v346_v17 = vor.u32 %v372_v16, %v345_v15  ;;  %v66_v20 = vld [vmem:[%s572_s8] sm:$0x3f]  ;;  %v60_v28 = vld [vmem:[%s568_s4 + $0x10] sm:$0xff]  ;;  %v61_v38 = vld [vmem:[%s568_s4 + $0x18] sm:$0x3]  ;;  %vm301_vm6 = vcmask 48128  }
   0x9   :  { %347 = vmatmul.msk.bf16.vlgmr.msra.gmra.mxu0 %vm101_vm2, %v371_v10  ;;  %v67_v21 = vld [vmem:[%s574_s10] sm:$0x3]  ;;  %152 = vperm.xlu2 %382, %v60_v28   ;;  %v64_v44 = vld [vmem:[%s570_s6 + $0x10] sm:$0xff]  ;;  %v63_v45 = vld [vmem:[%s570_s6 + $0x8] sm:$0xff]  ;;  %s411_s22 = smov [#allocation2]   ;;  %s330_s25 = sshll.u32 %s575_s11, 4  ;;  %s331_s25 = int_to_ptr.hbm [resolvable:$true] %s330_s25 }
   0xa   :  { %88 = vperm.xlu0 %380, %v57_v11   ;;  %v373_v43 = vld [vmem:[%s567_s3] sm:$0xff]  ;;  %v355_v46 = vld [vmem:[%s567_s3 + $0x8] sm:$0xf]  ;;  %v374_v47 = vld [vmem:[%s567_s3 + $0x8] sm:$0x10]  ;;  %s328_s23 = sshll.u32 %s411_s22, 4  ;;  %s329_s23 = int_to_ptr.vmem [resolvable:$true] %s328_s23 }
   0xb   :  { %78 = vperm.xlu1 %381, %v55_v12   ;;  %v356_v48 = vor.u32 %v374_v47, %v355_v46  ;;  %v375_v4 = vld [vmem:[%s569_s5] sm:$0xff]  ;;  %v365_v5 = vld [vmem:[%s569_s5 + $0x8] sm:$0xf]  ;;  %v376_v6 = vld [vmem:[%s569_s5 + $0x8] sm:$0x10] }
   0xc   :  { %v366_v7 = vor.u32 %v376_v6, %v365_v5 }
  0x11   :  { %157 = vperm.xlu2 %382, %v61_v38  }
  0x12   :  { %142 = vperm.xlu0 %380, %v58_v13  }
  0x13   :  { %147 = vperm.xlu1 %381, %v59_v14  }
  0x19   :  { %348 = vmatmul.msk.bf16.gmra.mxu0 %vm101_vm2, %v346_v17  ;;  %218 = vperm.xlu2 %382, %v64_v44  }
  0x1a   :  { %223 = vperm.xlu0 %380, %v65_v18  }
  0x1b   :  { %208 = vperm.xlu1 %381, %v62_v19  }
  0x21   :  { %213 = vperm.xlu2 %382, %v63_v45  }
  0x22   :  { %272 = vperm.xlu0 %380, %v66_v20  }
  0x23   :  { %298 = vperm.xlu1 %381, %v67_v21  }
  0x63   :  { %v153_v51 = vpop.permute.xlu2 %152 }
  0x6b   :  { %v158_v54 = vpop.permute.xlu2 %157 }
  0x73   :  { %v219_v10 = vpop.permute.xlu2 %218 }
  0x74   :  { %v84_v24 = vpop.permute.xlu0 %83 }
  0x75   :  { %v74_v25 = vpop.permute.xlu1 %73 }
  0x7b   :  { %v214_v15 = vpop.permute.xlu2 %213 }
  0x7c   :  { %v89_v29 = vpop.permute.xlu0 %88 }
  0x7d   :  { %v79_v31 = vpop.permute.xlu1 %78 }
  0x84   :  { %v143_v59 = vpop.permute.xlu0 %142 }
  0x85   :  { %v148_v56 = vpop.permute.xlu1 %147 }
  0x86   :  { %v124_v22 = vpop.f32.mrf.mxu0 }
  0x87   :  { %v125_v36 = vadd.f32 %v124_v22, %v74_v25 }
  0x89   :  { %v134_v41 = vmax.f32 %v125_v36, 0.0 }
  0x8c   :  { %v224_v13 = vpop.permute.xlu0 %223 }
  0x8d   :  { %v209_v18 = vpop.permute.xlu1 %208 }
  0x8e   :  { %v126_v23 = vpop.f32.mrf.mxu0 }
  0x8f   :  { %v127_v33 = vadd.f32 %v126_v23, %v79_v31 }
  0x91   :  { %v135_v39 = vmax.f32 %v127_v33, 0.0 }
  0x93   :  { %v138_v42 = vpack.c.bf16 %v135_v39, %v134_v41 }
  0x94   :  { %v273_v28 = vpop.permute.xlu0 %272 }
  0x95   :  { %v299_v36 = vpop.permute.xlu1 %298 }
  0x96   :  { %v129_v26 = vpop.f32.mrf.mxu0 }
  0x97   :  { %v130_v27 = vadd.f32 %v129_v26, %v84_v24 }
  0x99   :  { %v136_v34 = vmax.f32 %v130_v27, 0.0  ;;  %v52_v27 = vld [vmem:[%s571_s7] sm:$0x7] }
  0x9e   :  { %v131_v30 = vpop.f32.mrf.mxu0 }
  0x9f   :  { %v132_v32 = vadd.f32 %v131_v30, %v89_v29 }
  0xa1   :  { %v137_v35 = vmax.f32 %v132_v32, 0.0 }
  0xa3   :  { %v139_v37 = vpack.c.bf16 %v137_v35, %v136_v34  ;;  %v53_v35 = vld [vmem:[%s573_s9] sm:$0x1] }
  0xa5   :  { %v179_v40 = vsel %vm177_vm3, %v139_v37, 0 }
  0xa6   :  { %187 = vmatpush.bf16.msra.mxu1 %v179_v40 }
  0xaa   :  { %188 = vmatpush.bf16.msra.mxu1 %v138_v42 }
  0xad   :  { %357 = vmatmul.msk.bf16.vlgmr.msra.gmra.mxu1 %vm170_vm4, %v373_v43 }
  0xbd   :  { %358 = vmatmul.msk.bf16.gmra.mxu1 %vm170_vm4, %v356_v48 }
 0x12a   :  { %v190_v49 = vpop.f32.mrf.mxu1 }
 0x12b   :  { %v191_v62 = vadd.f32 %v190_v49, %v143_v59 }
 0x12d   :  { %v200_v2 = vmax.f32 %v191_v62, 0.0 }
 0x132   :  { %v192_v50 = vpop.f32.mrf.mxu1 }
 0x133   :  { %v193_v58 = vadd.f32 %v192_v50, %v148_v56 }
 0x135   :  { %v201_v0 = vmax.f32 %v193_v58, 0.0 }
 0x137   :  { %v204_v3 = vpack.c.bf16 %v201_v0, %v200_v2 }
 0x13a   :  { %v195_v52 = vpop.f32.mrf.mxu1 }
 0x13b   :  { %v196_v53 = vadd.f32 %v195_v52, %v153_v51 }
 0x13d   :  { %v202_v60 = vmax.f32 %v196_v53, 0.0 }
 0x142   :  { %v197_v55 = vpop.f32.mrf.mxu1 }
 0x143   :  { %v198_v57 = vadd.f32 %v197_v55, %v158_v54 }
 0x145   :  { %v203_v61 = vmax.f32 %v198_v57, 0.0 }
 0x147   :  { %v205_v63 = vpack.c.bf16 %v203_v61, %v202_v60 }
 0x149   :  { %v243_v1 = vsel %vm177_vm3, %v205_v63, 0 }
 0x14a   :  { %251 = vmatpush.bf16.msra.mxu2 %v243_v1 }
 0x14e   :  { %252 = vmatpush.bf16.msra.mxu2 %v204_v3 }
 0x151   :  { %367 = vmatmul.msk.bf16.vlgmr.msra.gmra.mxu2 %vm170_vm4, %v375_v4 }
 0x161   :  { %368 = vmatmul.msk.bf16.gmra.mxu2 %vm170_vm4, %v366_v7 }
 0x1d4   :  { %v254_v8 = vpop.f32.mrf.mxu2 }
 0x1d5   :  { %v255_v21 = vadd.f32 %v254_v8, %v209_v18 }
 0x1d7   :  { %v264_v25 = vmax.f32 %v255_v21, 0.0 }
 0x1dc   :  { %v256_v9 = vpop.f32.mrf.mxu2 }
 0x1dd   :  { %v257_v17 = vadd.f32 %v256_v9, %v214_v15 }
 0x1df   :  { %v265_v23 = vmax.f32 %v257_v17, 0.0 }
 0x1e1   :  { %v268_v26 = vpack.c.bf16 %v265_v23, %v264_v25 }
 0x1e4   :  { %v259_v11 = vpop.f32.mrf.mxu2 }
 0x1e5   :  { %v260_v12 = vadd.f32 %v259_v11, %v219_v10 }
 0x1e7   :  { %v266_v19 = vmax.f32 %v260_v12, 0.0 }
 0x1ec   :  { %v261_v14 = vpop.f32.mrf.mxu2 }
 0x1ed   :  { %v262_v16 = vadd.f32 %v261_v14, %v224_v13 }
 0x1ef   :  { %v267_v20 = vmax.f32 %v262_v16, 0.0 }
 0x1f1   :  { %v269_v22 = vpack.c.bf16 %v267_v20, %v266_v19 }
 0x1f3   :  { %v279_v24 = vsel %vm177_vm3, %v269_v22, 0 }
 0x1f4   :  { %287 = vmatpush.bf16.msra.mxu3 %v279_v24 }
 0x1f8   :  { %288 = vmatpush.bf16.msra.mxu3 %v268_v26 }
 0x1fb   :  { %369 = vmatmul.msk.bf16.vlgmr.msra.gmra.mxu3 %vm170_vm4, %v52_v27 }
 0x27e   :  { %v290_v29 = vpop.f32.mrf.mxu3 }
 0x27f   :  { %v291_v30 = vadd.f32 %v290_v29, %v273_v28 }
 0x281   :  { %v294_v31 = vmax.f32 %v291_v30, 0.0 }
 0x283   :  { %v295_v32 = vpack.c.bf16 %v294_v31, %v294_v31 }
 0x285   :  { %v307_v33 = vsel %vm305_vm5, %v295_v32, 0 }
 0x286   :  { %v292_v34 = vpop.f32.mrf.mxu3  ;;  %316 = vmatpush.bf16.msrb.mxu3 %v307_v33 }
 0x289   :  { %370 = vmatmul.msk.bf16.vlgmr.msrb.gmra.mxu3 %vm301_vm6, %v53_v35 }
 0x30c   :  { %v318_v37 = vpop.f32.mrf.mxu3 }
 0x30d   :  { %v319_v38 = vadd.f32 %v318_v37, %v299_v36 }
 0x30f   :  { %322 = vst [vmem:[#allocation2] sm:$0x3] %v319_v38 }
 0x310   :  { %333 = dma.vmem_to_hbm [thread:$0]  %s329_s23, 32, %s331_s25, [#allocation3]  }
 0x314   :  { %v320_v39 = vpop.f32.mrf.mxu3 }
 0x315   :  { %407 = dma.done.wait [#allocation3], 32  }
 0x316   :  { %408 = vsyncadd [#allocation3], 4294967264 }
 0x317   :  { %338 = vsyncpa [#allocation3], 1 }

</bundles_post_ra>
